<compile_context>
chip_gen: v7x
topology: tpu7x:2x2x1
jax: 0.10.0
libtpu: 0.0.40
codegen_flags: <defaults>
</compile_context>

<pallas_src>
import jax
import jax.numpy as jnp
from jax.experimental import pallas as pl
from jax.experimental.pallas import tpu as pltpu


# ----------------------------------------------------------------------------
# Kernel
# ----------------------------------------------------------------------------
def _critic_kernel(obs_ref, t_ref, act_ref, w1o_ref, w1a_ref, w2_ref, w3_ref,
                   aux_ref, out_ref):
    obs = obs_ref[...]                       # (TB, F)    bf16
    act = act_ref[...]                       # (TB, A)    bf16
    t = t_ref[...]                           # (TB, 1)    f32

    b1 = aux_ref[0:1, :]                     # (1, 2H) f32
    b2 = aux_ref[1:2, :]                     # (1, 2H) f32
    b3 = aux_ref[2:3, 0:2]                   # (1, 2)  f32
    wt = aux_ref[3:4, :]                     # (1, 2H) f32  (layer-1 row for t)

    # --- layer 1, both heads fused; "concat" done via split weights ----------
    h = jnp.dot(obs, w1o_ref[...], preferred_element_type=jnp.float32)
    h = h + jnp.dot(act, w1a_ref[...], preferred_element_type=jnp.float32)
    h = h + t * wt + b1                      # elementwise kept in f32
    h = jnp.maximum(h, 0.0)

    # --- layer 2, block-diagonal fused weight ---------------------------------
    h = jnp.dot(h.astype(w2_ref.dtype), w2_ref[...],
                preferred_element_type=jnp.float32) + b2
    h = jnp.maximum(h, 0.0)

    # --- layer 3, both (H -> 1) heads fused into one (2H, 2) projection -------
    out_ref[...] = jnp.dot(h.astype(w3_ref.dtype), w3_ref[...],
                           preferred_element_type=jnp.float32) + b3


# ----------------------------------------------------------------------------
# Host-side parameter packing (done once, outside the hot path)
# ----------------------------------------------------------------------------
def pack_params(params, feature_dim, weight_dtype=jnp.bfloat16):
    (w11, b11, w12, b12, w13, b13,
     w21, b21, w22, b22, w23, b23) = params
    F = feature_dim
    H = w11.shape[1]

    # layer 1: pack both heads along lanes; split out obs/action rows and the
    # t row so the kernel never slices a weight tile along sublanes.
    w1_obs = jnp.concatenate([w11[:F], w21[:F]], axis=1).astype(weight_dtype)
    w1_act = jnp.concatenate([w11[F + 1:], w21[F + 1:]],
                             axis=1).astype(weight_dtype)
    w1_t = jnp.concatenate([w11[F:F + 1], w21[F:F + 1]], axis=1)     # (1, 2H)

    # layer 2: block diagonal (zero blocks live in lane padding anyway).
    z = jnp.zeros((H, H), w12.dtype)
    w2p = jnp.concatenate(
        [jnp.concatenate([w12, z], axis=1),
         jnp.concatenate([z, w22], axis=1)], axis=0).astype(weight_dtype)

    # layer 3: single (2H, 2) projection.
    z1 = jnp.zeros((H, 1), w13.dtype)
    w3p = jnp.concatenate(
        [jnp.concatenate([w13, z1], axis=1),
         jnp.concatenate([z1, w23], axis=1)], axis=0).astype(weight_dtype)

    # aux (f32): row0 = b1, row1 = b2, row2 = b3 (lane-padded), row3 = t-row.
    b1 = jnp.concatenate([b11, b21], axis=1)                         # (1, 2H)
    b2 = jnp.concatenate([b12, b22], axis=1)                         # (1, 2H)
    b3 = jnp.pad(jnp.concatenate([b13, b23], axis=1),
                 ((0, 0), (0, 2 * H - 2)))                           # (1, 2H)
    aux = jnp.concatenate([b1, b2, b3, w1_t], axis=0).astype(jnp.float32)

    return w1_obs, w1_act, w2p, w3p, aux


# ----------------------------------------------------------------------------
# Forward wrapper
# ----------------------------------------------------------------------------
def my_critic_forward(obs, t, action, packed, *, tile_b_max=512):
    """obs: [B, F], t: [B, 1], action: [B, A]  ->  (q1, q2), each [B, 1]."""
    w1o, w1a, w2p, w3p, aux = packed
    B, F = obs.shape
    A = action.shape[1]
    H2 = w1o.shape[1]

    obs = obs.astype(w1o.dtype)
    action = action.astype(w1o.dtype)
    t = t.astype(jnp.float32)

    # Batch tiling: single step for small B (padded to a sublane multiple of
    # 8), otherwise a parallel grid over 512-row tiles (weights stay resident
    # via constant index maps).
    if B <= tile_b_max:
        tile_b = max(8, ((B + 7) // 8) * 8)
    else:
        tile_b = tile_b_max
    Bp = ((B + tile_b - 1) // tile_b) * tile_b
    pad = Bp - B
    if pad:
        obs = jnp.pad(obs, ((0, pad), (0, 0)))
        t = jnp.pad(t, ((0, pad), (0, 0)))
        action = jnp.pad(action, ((0, pad), (0, 0)))
    grid = (Bp // tile_b,)

    out = pl.pallas_call(
        _critic_kernel,
        out_shape=jax.ShapeDtypeStruct((Bp, 2), jnp.float32),
        grid_spec=pltpu.PrefetchScalarGridSpec(
            num_scalar_prefetch=0,
            grid=grid,
            in_specs=[
                pl.BlockSpec((tile_b, F), lambda i: (i, 0)),   # obs
                pl.BlockSpec((tile_b, 1), lambda i: (i, 0)),   # t
                pl.BlockSpec((tile_b, A), lambda i: (i, 0)),   # action
                pl.BlockSpec((F, H2), lambda i: (0, 0)),       # w1 obs rows
                pl.BlockSpec((A, H2), lambda i: (0, 0)),       # w1 action rows
                pl.BlockSpec((H2, H2), lambda i: (0, 0)),      # w2 packed
                pl.BlockSpec((H2, 2), lambda i: (0, 0)),       # w3 packed
                pl.BlockSpec((4, H2), lambda i: (0, 0)),       # biases + t row
            ],
            out_specs=pl.BlockSpec((tile_b, 2), lambda i: (i, 0)),
        ),
        compiler_params=pltpu.CompilerParams(
            dimension_semantics=("parallel",)),
    )(obs, t, action, w1o, w1a, w2p, w3p, aux)

    return out[:B, 0:1], out[:B, 1:2]


# ----------------------------------------------------------------------------
# Parameter init (stand-in for utils.weight_init) and numerics-matched reference
# ----------------------------------------------------------------------------
def init_params(key, feature_dim, action_dim, hidden_dim):
    # TODO(synk): utils.weight_init uses orthogonal init; deterministic scaled
    # normal is used here as a stand-in (init is not part of the forward pass).
    d_in = feature_dim + 1 + action_dim
    shapes = [
        (d_in, hidden_dim), (1, hidden_dim),
        (hidden_dim, hidden_dim), (1, hidden_dim),
        (hidden_dim, 1), (1, 1),
    ] * 2  # Q1 then Q2
    keys = jax.random.split(key, len(shapes))
    params = []
    for k, s in zip(keys, shapes):
        fan_in = s[0] if s[0] > 1 else s[1]
        scale = 1.0 / jnp.sqrt(jnp.float32(fan_in))
        params.append(scale * jax.random.normal(k, s, dtype=jnp.float32))
    return tuple(params)


def _reference_forward(obs, t, action, params, feature_dim,
                       dtype=jnp.bfloat16):
    """Pure-JAX reference mirroring the kernel numerics (bf16 operands,
    f32 accumulation, f32 bias/ReLU, f32 t path)."""
    (w11, b11, w12, b12, w13, b13,
     w21, b21, w22, b22, w23, b23) = params
    F = feature_dim
    obs = obs.astype(dtype)
    act = action.astype(dtype)
    t = t.astype(jnp.float32)

    def head(w1, b1, w2, b2, w3, b3):
        h = jnp.dot(obs, w1[:F].astype(dtype),
                    preferred_element_type=jnp.float32)
        h = h + jnp.dot(act, w1[F + 1:].astype(dtype),
                        preferred_element_type=jnp.float32)
        h = h + t * w1[F:F + 1] + b1
        h = jnp.maximum(h, 0.0)
        h = jnp.maximum(
            jnp.dot(h.astype(dtype), w2.astype(dtype),
                    preferred_element_type=jnp.float32) + b2, 0.0)
        return jnp.dot(h.astype(dtype), w3.astype(dtype),
                       preferred_element_type=jnp.float32) + b3

    return (head(w11, b11, w12, b12, w13, b13),
            head(w21, b21, w22, b22, w23, b23))


# ----------------------------------------------------------------------------
if __name__ == "__main__":
    batch = 8
    feature_dim = 32
    action_dim = 4       # action_shape = (4,)
    hidden_dim = 32

    key = jax.random.PRNGKey(0)
    k_obs, k_t, k_act, k_par = jax.random.split(key, 4)
    obs = jax.random.normal(k_obs, (batch, feature_dim), dtype=jnp.float32)
    t = jax.random.normal(k_t, (batch, 1), dtype=jnp.float32)
    action = jax.random.normal(k_act, (batch, action_dim), dtype=jnp.float32)

    params = init_params(k_par, feature_dim, action_dim, hidden_dim)
    packed = pack_params(params, feature_dim)

    q1, q2 = jax.jit(my_critic_forward)(obs, t, action, packed)
    q1 = jax.block_until_ready(q1)
    q2 = jax.block_until_ready(q2)

    # correctness check against a numerics-matched pure-JAX reference
    r1, r2 = _reference_forward(obs, t, action, params, feature_dim)
    assert q1.shape == (batch, 1) and q2.shape == (batch, 1)
    assert jnp.allclose(q1, r1, atol=1e-3, rtol=1e-3)
    assert jnp.allclose(q2, r2, atol=1e-3, rtol=1e-3)

    print("KERNEL_OK")
</pallas_src>

<mosaic_0001>
module attributes {stable_mosaic.version = 11 : i64} {
  func.func @_critic_kernel(%arg0: i32, %arg1: memref<8x32xbf16, #tpu.memory_space<vmem>>, %arg2: memref<8x1xf32, #tpu.memory_space<vmem>>, %arg3: memref<8x4xbf16, #tpu.memory_space<vmem>>, %arg4: memref<32x64xbf16, #tpu.memory_space<vmem>>, %arg5: memref<4x64xbf16, #tpu.memory_space<vmem>>, %arg6: memref<64x64xbf16, #tpu.memory_space<vmem>>, %arg7: memref<64x2xbf16, #tpu.memory_space<vmem>>, %arg8: memref<4x64xf32, #tpu.memory_space<vmem>>, %arg9: memref<8x2xf32, #tpu.memory_space<vmem>>) attributes {dimension_semantics = [#tpu.dimension_semantics<parallel>], iteration_bounds = array<i64: 1>, scalar_prefetch = 0 : i64, scratch_operands = 0 : i64, tpu.core_type = #tpu.core_type<tc>, window_params = [{transform_indices = @transform_0, window_bounds = array<i64: 8, 32>}, {transform_indices = @transform_1, window_bounds = array<i64: 8, 1>}, {transform_indices = @transform_2, window_bounds = array<i64: 8, 4>}, {pipeline_mode = #tpu.pipeline_mode<synchronous>, transform_indices = @transform_3, window_bounds = array<i64: 32, 64>}, {pipeline_mode = #tpu.pipeline_mode<synchronous>, transform_indices = @transform_4, window_bounds = array<i64: 4, 64>}, {pipeline_mode = #tpu.pipeline_mode<synchronous>, transform_indices = @transform_5, window_bounds = array<i64: 64, 64>}, {pipeline_mode = #tpu.pipeline_mode<synchronous>, transform_indices = @transform_6, window_bounds = array<i64: 64, 2>}, {pipeline_mode = #tpu.pipeline_mode<synchronous>, transform_indices = @transform_7, window_bounds = array<i64: 4, 64>}, {transform_indices = @transform_8, window_bounds = array<i64: 8, 2>}]} {
    %c0 = arith.constant 0 : index
    %c0_0 = arith.constant 0 : index
    %0 = vector.load %arg1[%c0, %c0_0] : memref<8x32xbf16, #tpu.memory_space<vmem>>, vector<8x32xbf16>
    %c0_1 = arith.constant 0 : index
    %c0_2 = arith.constant 0 : index
    %1 = vector.load %arg3[%c0_1, %c0_2] : memref<8x4xbf16, #tpu.memory_space<vmem>>, vector<8x4xbf16>
    %c0_3 = arith.constant 0 : index
    %c0_4 = arith.constant 0 : index
    %2 = vector.load %arg2[%c0_3, %c0_4] : memref<8x1xf32, #tpu.memory_space<vmem>>, vector<8x1xf32>
    %c0_5 = arith.constant 0 : index
    %c0_6 = arith.constant 0 : index
    %3 = vector.load %arg8[%c0_5, %c0_6] : memref<4x64xf32, #tpu.memory_space<vmem>>, vector<1x64xf32>
    %c1 = arith.constant 1 : index
    %c0_7 = arith.constant 0 : index
    %4 = vector.load %arg8[%c1, %c0_7] : memref<4x64xf32, #tpu.memory_space<vmem>>, vector<1x64xf32>
    %c2 = arith.constant 2 : index
    %c0_8 = arith.constant 0 : index
    %5 = vector.load %arg8[%c2, %c0_8] : memref<4x64xf32, #tpu.memory_space<vmem>>, vector<1x2xf32>
    %c3 = arith.constant 3 : index
    %c0_9 = arith.constant 0 : index
    %6 = vector.load %arg8[%c3, %c0_9] : memref<4x64xf32, #tpu.memory_space<vmem>>, vector<1x64xf32>
    %c0_10 = arith.constant 0 : index
    %c0_11 = arith.constant 0 : index
    %7 = vector.load %arg4[%c0_10, %c0_11] : memref<32x64xbf16, #tpu.memory_space<vmem>>, vector<32x64xbf16>
    %cst = arith.constant dense<0.000000e+00> : vector<8x64xf32>
    %8 = tpu.matmul %0, %7, %cst {dimension_numbers = #tpu.dot_dimension_numbers<[1], [0], [0], [1], [0, 0, 1, 1], [], []>} : vector<8x32xbf16>, vector<32x64xbf16>, vector<8x64xf32> -> vector<8x64xf32>
    %c0_12 = arith.constant 0 : index
    %c0_13 = arith.constant 0 : index
    %9 = vector.load %arg5[%c0_12, %c0_13] : memref<4x64xbf16, #tpu.memory_space<vmem>>, vector<4x64xbf16>
    %cst_14 = arith.constant dense<0.000000e+00> : vector<8x64xf32>
    %10 = tpu.matmul %1, %9, %cst_14 {dimension_numbers = #tpu.dot_dimension_numbers<[1], [0], [0], [1], [0, 0, 1, 1], [], []>} : vector<8x4xbf16>, vector<4x64xbf16>, vector<8x64xf32> -> vector<8x64xf32>
    %11 = arith.addf %8, %10 : vector<8x64xf32>
    %12 = vector.broadcast %2 : vector<8x1xf32> to vector<8x64xf32>
    %13 = vector.broadcast %6 : vector<1x64xf32> to vector<8x64xf32>
    %14 = arith.mulf %12, %13 : vector<8x64xf32>
    %15 = arith.addf %11, %14 : vector<8x64xf32>
    %16 = vector.broadcast %3 : vector<1x64xf32> to vector<8x64xf32>
    %17 = arith.addf %15, %16 : vector<8x64xf32>
    %cst_15 = arith.constant 0.000000e+00 : f32
    %18 = vector.broadcast %cst_15 : f32 to vector<8x64xf32>
    %19 = arith.maximumf %17, %18 : vector<8x64xf32>
    %20 = arith.truncf %19 : vector<8x64xf32> to vector<8x64xbf16>
    %c0_16 = arith.constant 0 : index
    %c0_17 = arith.constant 0 : index
    %21 = vector.load %arg6[%c0_16, %c0_17] : memref<64x64xbf16, #tpu.memory_space<vmem>>, vector<64x64xbf16>
    %cst_18 = arith.constant dense<0.000000e+00> : vector<8x64xf32>
    %22 = tpu.matmul %20, %21, %cst_18 {dimension_numbers = #tpu.dot_dimension_numbers<[1], [0], [0], [1], [0, 0, 1, 1], [], []>} : vector<8x64xbf16>, vector<64x64xbf16>, vector<8x64xf32> -> vector<8x64xf32>
    %23 = vector.broadcast %4 : vector<1x64xf32> to vector<8x64xf32>
    %24 = arith.addf %22, %23 : vector<8x64xf32>
    %cst_19 = arith.constant 0.000000e+00 : f32
    %25 = vector.broadcast %cst_19 : f32 to vector<8x64xf32>
    %26 = arith.maximumf %24, %25 : vector<8x64xf32>
    %27 = arith.truncf %26 : vector<8x64xf32> to vector<8x64xbf16>
    %c0_20 = arith.constant 0 : index
    %c0_21 = arith.constant 0 : index
    %28 = vector.load %arg7[%c0_20, %c0_21] : memref<64x2xbf16, #tpu.memory_space<vmem>>, vector<64x2xbf16>
    %cst_22 = arith.constant dense<0.000000e+00> : vector<8x2xf32>
    %29 = tpu.matmul %27, %28, %cst_22 {dimension_numbers = #tpu.dot_dimension_numbers<[1], [0], [0], [1], [0, 0, 1, 1], [], []>} : vector<8x64xbf16>, vector<64x2xbf16>, vector<8x2xf32> -> vector<8x2xf32>
    %30 = vector.broadcast %5 : vector<1x2xf32> to vector<8x2xf32>
    %31 = arith.addf %29, %30 : vector<8x2xf32>
    %c0_23 = arith.constant 0 : index
    %c0_24 = arith.constant 0 : index
    %32 = vector.load %arg9[%c0_23, %c0_24] : memref<8x2xf32, #tpu.memory_space<vmem>>, vector<8x2xf32>
    tpu.vector_store %arg9[%c0_23, %c0_24], %31 {strides = array<i32>} : memref<8x2xf32, #tpu.memory_space<vmem>>, vector<8x2xf32>,
    return
  }
  func.func @transform_0(%arg0: i32) -> (i32, i32) {
    %c0_i32 = arith.constant 0 : i32
    %c0_i32_0 = arith.constant 0 : i32
    return %arg0, %c0_i32 : i32, i32
  }
  func.func @transform_1(%arg0: i32) -> (i32, i32) {
    %c0_i32 = arith.constant 0 : i32
    %c0_i32_0 = arith.constant 0 : i32
    return %arg0, %c0_i32 : i32, i32
  }
  func.func @transform_2(%arg0: i32) -> (i32, i32) {
    %c0_i32 = arith.constant 0 : i32
    %c0_i32_0 = arith.constant 0 : i32
    return %arg0, %c0_i32 : i32, i32
  }
  func.func @transform_3(%arg0: i32) -> (i32, i32) {
    %c0_i32 = arith.constant 0 : i32
    %c0_i32_0 = arith.constant 0 : i32
    %c0_i32_1 = arith.constant 0 : i32
    return %c0_i32, %c0_i32_0 : i32, i32
  }
  func.func @transform_4(%arg0: i32) -> (i32, i32) {
    %c0_i32 = arith.constant 0 : i32
    %c0_i32_0 = arith.constant 0 : i32
    %c0_i32_1 = arith.constant 0 : i32
    return %c0_i32, %c0_i32_0 : i32, i32
  }
  func.func @transform_5(%arg0: i32) -> (i32, i32) {
    %c0_i32 = arith.constant 0 : i32
    %c0_i32_0 = arith.constant 0 : i32
    %c0_i32_1 = arith.constant 0 : i32
    return %c0_i32, %c0_i32_0 : i32, i32
  }
  func.func @transform_6(%arg0: i32) -> (i32, i32) {
    %c0_i32 = arith.constant 0 : i32
    %c0_i32_0 = arith.constant 0 : i32
    %c0_i32_1 = arith.constant 0 : i32
    return %c0_i32, %c0_i32_0 : i32, i32
  }
  func.func @transform_7(%arg0: i32) -> (i32, i32) {
    %c0_i32 = arith.constant 0 : i32
    %c0_i32_0 = arith.constant 0 : i32
    %c0_i32_1 = arith.constant 0 : i32
    return %c0_i32, %c0_i32_0 : i32, i32
  }
  func.func @transform_8(%arg0: i32) -> (i32, i32) {
    %c0_i32 = arith.constant 0 : i32
    %c0_i32_0 = arith.constant 0 : i32
    return %arg0, %c0_i32 : i32, i32
  }
}

</mosaic_0001>

<bundles_post_ra>
// kernel: my_critic_forward.1
= control target key start
LH: loop header
LB: loop body
LE: loop exit
PB: predicated region body
PF: predicated region fallthrough
CT: control target
= control target key end

     0   :  { %vm46_vm0 = vcmask 1041408   ;;  %v416_v0 = vmov 0.0   ;;  %vm417_vm1 = vmmov 0   ;;  %vm42_vm2 = vcmask 31744   ;;  %s543_s3 = inlined_call_operand.vmem [shape: bf16[32,64], index: 3, kind: input, shape index: {}]   ;;  %s544_s4 = inlined_call_operand.vmem [shape: bf16[4,64], index: 4, kind: input, shape index: {}]   ;;  %s545_s2 = inlined_call_operand.vmem [shape: bf16[8,4], index: 2, kind: input, shape index: {}]   ;;  %s546_s1 = inlined_call_operand.vmem [shape: f32[8,1], index: 1, kind: input, shape index: {}]   ;;  %s547_s5 = inlined_call_operand.vmem [shape: bf16[64,64], index: 5, kind: input, shape index: {}]   ;;  %s548_s0 = inlined_call_operand.vmem [shape: bf16[8,32], index: 0, kind: input, shape index: {}]   ;;  %s549_s6 = inlined_call_operand.vmem [shape: bf16[64,2], index: 6, kind: input, shape index: {}]   ;;  %s550_s7 = inlined_call_operand.vmem [shape: f32[4,64], index: 7, kind: input, shape index: {}]   ;;  %s551_s8 = inlined_call_operand.vmem [shape: f32[8,2], index: 8, kind: output, shape index: {}]  }
   0x1   :  { %370 = vmatprep.subr.bf16.mxu1 %v416_v0  ;;  %364 = vmatprep.subr.bf16.mxu0 %v416_v0  ;;  %v406_v1 = vld [vmem:[%s543_s3] sm:$0xff]   ;;  %v407_v5 = vld [vmem:[%s543_s3 + $0x8] sm:$0xff]   ;;  %v418_v7 = vmov 0   ;;  %vm102_vm3 = vcmask 261120   ;;  %v410_v11 = vld [vmem:[%s547_s5 + $0x10] sm:$0xff]   ;;  %vm200_vm4 = vcmask 523264  }
   0x2   :  { %v41_v2 = vld [vmem:[%s544_s4] sm:$0x3]  ;;  %366 = vmatprep.mubr.msk.bf16.mxu0 %vm417_vm1, %v416_v0  ;;  %374 = vmatprep.mubr.msk.bf16.mxu1 %vm417_vm1, %v416_v0  ;;  %v409_v10 = vld [vmem:[%s547_s5 + $0x8] sm:$0xff]   ;;  %v411_v12 = vld [vmem:[%s547_s5 + $0x18] sm:$0xff]   ;;  %vm325_vm5 = vcmask 15360  }
   0x3   :  { %371 = vmatpush3.bf16.msra.mxu1 %v406_v1  ;;  %v48_v3 = vsel %vm46_vm0, %v41_v2, 0  ;;  %v31_v4 = vld [vmem:[%s545_s2] sm:$0xf]  ;;  %405 = vset.pattern.permute.xlu0 %v418_v7  ;;  %v413_v14 = vld [vmem:[%s549_s6 + $0x8] sm:$0xff]   ;;  %v414_v32 = vld [vmem:[%s549_s6 + $0x10] sm:$0xff]  }
   0x4   :  { %365 = vmatpush3.bf16.msra.mxu0 %v48_v3  ;;  %372 = vmatprep.subr.bf16.mxu1 %v416_v0  ;;  %v32_v6 = vld [vmem:[%s546_s1] sm:$0xff]  ;;  %v415_v33 = vld [vmem:[%s549_s6 + $0x18] sm:$0xff]  }
   0x5   :  { %378 = vmatprep.subr.bf16.mxu0 %v416_v0  ;;  %v408_v8 = vld [vmem:[%s547_s5] sm:$0xff]   ;;  %148 = vperm.xlu0 %405, %v32_v6  }
   0x6   :  { %v30_v9 = vld [vmem:[%s548_s0] sm:$0xf] }
   0x7   :  { %367 = vmatmul.mubr.msk.bf16.vlgmr.msra.gmra.mrb[0].mxu0 %vm42_vm2, %v31_v4  ;;  %373 = vmatpush3.bf16.msra.mxu1 %v407_v5  ;;  %v412_v13 = vld [vmem:[%s549_s6] sm:$0xff]  }
   0x8   :  { %379 = vmatpush3.bf16.msra.mxu0 %v408_v8  ;;  %386 = vmatprep.mubr.msk.bf16.mxu0 %vm417_vm1, %v416_v0  ;;  %v335_v15 = vld [vmem:[%s550_s7 + $0x3] ss:$0 sm:$0xff]  ;;  %v336_v25 = vld [vmem:[%s550_s7] ss:$0 sm:$0xff]  ;;  %v337_v34 = vld [vmem:[%s550_s7 + $0x1] ss:$0 sm:$0xff] }
   0x9   :  { %380 = vmatprep.subr.bf16.mxu0 %v416_v0  ;;  %390 = vmatprep.subr.bf16.mxu1 %v416_v0  ;;  %v343_v42 = vld [vmem:[%s550_s7 + $0x2] ss:$0 sm:$0xff] }
   0xa   :  { %375 = vmatmul.mubr.msk.bf16.vlgmr.msra.gmra.mrb[0].mxu1 %vm102_vm3, %v30_v9 }
   0xb   :  { %398 = vmatprep.mubr.msk.bf16.mxu1 %vm417_vm1, %v416_v0  ;;  %391 = vmatpush3.bf16.msra.mxu1 %v412_v13 }
   0xc   :  { %381 = vmatpush3.bf16.msra.mxu0 %v409_v10  ;;  %392 = vmatprep.subr.bf16.mxu1 %v416_v0 }
   0xd   :  { %382 = vmatprep.subr.bf16.mxu0 %v416_v0 }
   0xf   :  { %393 = vmatpush3.bf16.msra.mxu1 %v413_v14 }
  0x10   :  { %383 = vmatpush3.bf16.msra.mxu0 %v410_v11  ;;  %394 = vmatprep.subr.bf16.mxu1 %v416_v0 }
  0x11   :  { %384 = vmatprep.subr.bf16.mxu0 %v416_v0 }
  0x13   :  { %395 = vmatpush3.bf16.msra.mxu1 %v414_v32 }
  0x14   :  { %385 = vmatpush3.bf16.msra.mxu0 %v411_v12  ;;  %396 = vmatprep.subr.bf16.mxu1 %v416_v0 }
  0x17   :  { %397 = vmatpush3.bf16.msra.mxu1 %v415_v33 }
  0x84   :  { %v149_v16 = vpop.permute.xlu0 %148 }
  0x85   :  { %v155_v20 = vmul.f32 %v335_v15, %v149_v16 }
  0xda   :  { %v84_v17 = vpop.f32.mrb[0].mxu0 }
  0xdb   :  { %v368_v18 = vpop.f32.mrb[1].mxu0 }
  0xdc   :  { %v87_v19 = vpop.f32.mrb[2].mxu0 }
  0xdd   :  { %v369_v21 = vpop.f32.mrb[3].mxu0  ;;  %v140_v22 = vpop.f32.mrb[0].mxu1 }
  0xde   :  { %v141_v23 = vadd.f32 %v140_v22, %v84_v17  ;;  %v376_v24 = vpop.f32.mrb[1].mxu1 }
  0xdf   :  { %v143_v26 = vpop.f32.mrb[2].mxu1 }
  0xe0   :  { %v156_v27 = vadd.f32 %v155_v20, %v141_v23  ;;  %v377_v28 = vpop.f32.mrb[3].mxu1 }
  0xe2   :  { %v161_v29 = vadd.f32 %v336_v25, %v156_v27 }
  0xe4   :  { %v162_v30 = vmax.f32 %v161_v29, 0.0 }
  0xe6   :  { %v163_v31 = vpack.c.bf16 %v162_v30, %v162_v30 }
  0xe8   :  { %387 = vmatmul.mubr.msk.bf16.vlgmr.msra.gmra.mrb[4].mxu0 %vm200_vm4, %v163_v31 }
 0x1bb   :  { %v238_v35 = vpop.f32.mrb[4].mxu0 }
 0x1bc   :  { %v239_v36 = vadd.f32 %v337_v34, %v238_v35  ;;  %v388_v37 = vpop.f32.mrb[5].mxu0 }
 0x1bd   :  { %v241_v38 = vpop.f32.mrb[6].mxu0 }
 0x1be   :  { %v244_v39 = vmax.f32 %v239_v36, 0.0  ;;  %v389_v40 = vpop.f32.mrb[7].mxu0 }
 0x1c0   :  { %v245_v41 = vpack.c.bf16 %v244_v39, %v244_v39 }
 0x1c2   :  { %399 = vmatmul.mubr.msk.bf16.vlgmr.msra.gmra.mrb[4].mxu1 %vm200_vm4, %v245_v41 }
 0x295   :  { %v319_v43 = vpop.f32.mrb[4].mxu1 }
 0x296   :  { %v320_v44 = vadd.f32 %v343_v42, %v319_v43  ;;  %v400_v45 = vpop.f32.mrb[5].mxu1 }
 0x297   :  { %v322_v46 = vpop.f32.mrb[6].mxu1 }
 0x298   :  { %326 = vst.msk [vmem:[%s551_s8] sm:$0xff] %vm325_vm5, %v320_v44  ;;  %v401_v47 = vpop.f32.mrb[7].mxu1 }

</bundles_post_ra>
